<compile_context>
chip_gen: v7x
topology: tpu7x:2x2x1
jax: 0.10.0
libtpu: 0.0.40
codegen_flags: <defaults>
</compile_context>

<pallas_src>
import functools

import jax
import jax.numpy as jnp
from jax.experimental import pallas as pl
from jax.experimental.pallas import tpu as pltpu

_VMEM_LIMIT_BYTES = 48 * 1024 * 1024      # raised from 32 MiB; safe on v7x (64 MiB phys)
_FUSED_VMEM_BUDGET = 8 * 1024 * 1024      # whole-problem fused path threshold
_XW_RESIDENT_BUDGET = 8 * 1024 * 1024     # keep XW VMEM-resident below this size


def _round_up(x, m):
    return ((x + m - 1) // m) * m


def _pick_tile(n, target, align):
    """Largest tile <= target that is a multiple of `align` and divides n,
    falling back to the full dimension n (always legal as a block shape)."""
    t = (min(target, n) // align) * align
    while t >= align:
        if n % t == 0:
            return t
        t -= align
    return n


def _pad_to(x, shape):
    return jnp.pad(x, [(0, s - d) for d, s in zip(x.shape, shape)])


# ---------------------------------------------------------------------------
# Fused small-graph kernel: both layers, everything VMEM-resident, one call.
# ---------------------------------------------------------------------------
def _fused_gcn_kernel(a_ref, x_ref, w1_ref, b1_ref, w2_ref, b2_ref, out_ref):
    a = a_ref[...]
    xw1 = jnp.dot(x_ref[...], w1_ref[...], preferred_element_type=jnp.float32)
    h = jnp.maximum(
        jnp.dot(a, xw1, preferred_element_type=jnp.float32) + b1_ref[...], 0.0
    )
    hw2 = jnp.dot(h, w2_ref[...], preferred_element_type=jnp.float32)
    y = jnp.dot(a, hw2, preferred_element_type=jnp.float32) + b2_ref[...]
    out_ref[...] = y.astype(out_ref.dtype)


def _fused_vmem_estimate_bytes(n_p, f_in_p, h_p, o_p):
    # f32 everywhere: A, X, intermediates (XW1, H, HW2), output, weights, biases.
    elems = (
        n_p * n_p
        + n_p * (f_in_p + 2 * h_p + 2 * o_p)
        + f_in_p * h_p
        + h_p * o_p
        + h_p
        + o_p
    )
    return 4 * elems


# ---------------------------------------------------------------------------
# Kernel 1 (tiled path): per-node feature transform  XW = X @ W
# ---------------------------------------------------------------------------
def _transform_kernel(x_ref, w_ref, out_ref):
    out_ref[...] = jnp.dot(
        x_ref[...], w_ref[...], preferred_element_type=jnp.float32
    ).astype(out_ref.dtype)


def feature_transform(x, w, *, out_dtype=jnp.bfloat16, row_tile=256):
    n, f_in = x.shape
    f_out = w.shape[1]
    tm = _pick_tile(n, row_tile, 256)
    return pl.pallas_call(
        _transform_kernel,
        out_shape=jax.ShapeDtypeStruct((n, f_out), out_dtype),
        grid=(n // tm,),
        in_specs=[
            pl.BlockSpec((tm, f_in), lambda i: (i, 0)),
            pl.BlockSpec((f_in, f_out), lambda i: (0, 0)),   # W resident
        ],
        out_specs=pl.BlockSpec((tm, f_out), lambda i: (i, 0)),
        compiler_params=pltpu.CompilerParams(
            dimension_semantics=("parallel",),
            vmem_limit_bytes=_VMEM_LIMIT_BYTES,
        ),
    )(x, w)


# ---------------------------------------------------------------------------
# Kernel 2 (tiled path): aggregation  Y = A_hat @ XW + b  [-> relu]
# ---------------------------------------------------------------------------
def _aggregate_kernel(a_ref, xw_ref, b_ref, out_ref, acc_ref, *,
                      apply_relu, tk, xw_resident):
    k = pl.program_id(1)

    @pl.when(k == 0)
    def _():
        acc_ref[...] = jnp.zeros_like(acc_ref)

    if xw_resident:
        # XW is fully VMEM-resident; slice out the current reduction block.
        start = pl.multiple_of(k * tk, tk)
        xw_blk = xw_ref[pl.ds(start, tk), :]
    else:
        xw_blk = xw_ref[...]

    acc_ref[...] += jnp.dot(
        a_ref[...], xw_blk, preferred_element_type=jnp.float32
    )

    @pl.when(k == pl.num_programs(1) - 1)
    def _():
        y = acc_ref[...] + b_ref[...]          # f32 epilogue (v5e-friendly)
        if apply_relu:
            y = jnp.maximum(y, 0.0)
        out_ref[...] = y.astype(out_ref.dtype)


def aggregate(a_hat, xw, b, *, apply_relu, out_dtype,
              row_tile=256, k_tile=1024):
    n = a_hat.shape[0]
    f_out = xw.shape[1]
    tm = _pick_tile(n, row_tile, 256)   # output row tile (parallel axis)
    tk = _pick_tile(n, k_tile, 128)     # reduction tile (lane-aligned)

    xw_bytes = xw.size * xw.dtype.itemsize
    xw_resident = xw_bytes <= _XW_RESIDENT_BUDGET
    if xw_resident:
        xw_spec = pl.BlockSpec((n, f_out), lambda i, k: (0, 0))      # resident
    else:
        xw_spec = pl.BlockSpec((tk, f_out), lambda i, k: (k, 0))     # streamed

    return pl.pallas_call(
        functools.partial(_aggregate_kernel, apply_relu=apply_relu,
                          tk=tk, xw_resident=xw_resident),
        out_shape=jax.ShapeDtypeStruct((n, f_out), out_dtype),
        grid=(n // tm, n // tk),
        in_specs=[
            pl.BlockSpec((tm, tk), lambda i, k: (i, k)),     # A_hat tile
            xw_spec,                                         # XW
            pl.BlockSpec((1, f_out), lambda i, k: (0, 0)),   # bias (resident)
        ],
        out_specs=pl.BlockSpec((tm, f_out), lambda i, k: (i, 0)),
        scratch_shapes=[pltpu.VMEM((tm, f_out), jnp.float32)],
        compiler_params=pltpu.CompilerParams(
            dimension_semantics=("parallel", "arbitrary"),
            vmem_limit_bytes=_VMEM_LIMIT_BYTES,
        ),
    )(a_hat, xw, b)


# ---------------------------------------------------------------------------
# Glue (plain JAX): normalized adjacency, padding, two-layer forward
# ---------------------------------------------------------------------------
def build_normalized_adjacency(edge_index, num_nodes):
    """Dense equivalent of PyG GCNConv normalization: D^-1/2 (A + I) D^-1/2."""
    src, dst = edge_index[0], edge_index[1]
    a = jnp.zeros((num_nodes, num_nodes), jnp.float32).at[dst, src].set(1.0)
    a = a + jnp.eye(num_nodes, dtype=jnp.float32)  # add self-loops
    deg = a.sum(axis=1)
    d_inv_sqrt = 1.0 / jnp.sqrt(deg)
    return d_inv_sqrt[:, None] * a * d_inv_sqrt[None, :]


def gcn_forward(x, edge_index, w1, b1, w2, b2):
    """relu(A_hat @ (X @ W1) + b1) -> A_hat @ (H @ W2) + b2."""
    n, f_in = x.shape
    hidden = w1.shape[1]
    d_out = w2.shape[1]

    a_hat = build_normalized_adjacency(edge_index, n)

    f_in_p = _round_up(f_in, 128)
    h_p = _round_up(hidden, 128)
    o_p = _round_up(d_out, 128)

    # ---- Small-graph path: single fused, fully VMEM-resident kernel (f32). --
    n_small = _round_up(n, 8)
    if _fused_vmem_estimate_bytes(n_small, f_in_p, h_p, o_p) <= _FUSED_VMEM_BUDGET:
        a_p = _pad_to(a_hat, (n_small, n_small))
        x_p = _pad_to(x, (n_small, f_in_p))
        w1_p = _pad_to(w1, (f_in_p, h_p))
        w2_p = _pad_to(w2, (h_p, o_p))
        b1_p = _pad_to(b1.reshape(1, -1), (1, h_p))
        b2_p = _pad_to(b2.reshape(1, -1), (1, o_p))
        y = pl.pallas_call(
            _fused_gcn_kernel,
            out_shape=jax.ShapeDtypeStruct((n_small, o_p), jnp.float32),
        )(a_p, x_p, w1_p, b1_p, w2_p, b2_p)
        return y[:n, :d_out]

    # ---- Large-graph tiled path. --------------------------------------------
    # Pad N to a multiple of 512: reduction tiles stay lane-dense multiples of
    # 128 (never (tm, N) fallback), and with tm=256 the row-block count is
    # even -> clean 2-TensorCore split on v7x.
    n_p = _round_up(n, 512)

    a_p = _pad_to(a_hat, (n_p, n_p)).astype(jnp.bfloat16)
    x_p = _pad_to(x, (n_p, f_in_p)).astype(jnp.bfloat16)
    w1_p = _pad_to(w1, (f_in_p, h_p)).astype(jnp.bfloat16)
    w2_p = _pad_to(w2, (h_p, o_p)).astype(jnp.bfloat16)
    b1_p = _pad_to(b1.reshape(1, -1), (1, h_p)).astype(jnp.float32)
    b2_p = _pad_to(b2.reshape(1, -1), (1, o_p)).astype(jnp.float32)

    # Layer 1: transform (hoisted, computed once) -> aggregate (+bias, relu)
    xw1 = feature_transform(x_p, w1_p)
    h = aggregate(a_p, xw1, b1_p, apply_relu=True, out_dtype=jnp.bfloat16)
    # Layer 2: transform -> aggregate (+bias), final output in f32
    hw2 = feature_transform(h, w2_p)
    y = aggregate(a_p, hw2, b2_p, apply_relu=False, out_dtype=jnp.float32)

    return y[:n, :d_out]


if __name__ == "__main__":
    INPUT_DIM, HIDDEN_DIM, OUTPUT_DIM = 16, 32, 8

    key = jax.random.PRNGKey(0)
    k_x1, k_x2, k_w1, k_b1, k_w2, k_b2 = jax.random.split(key, 6)

    def glorot(k, shape):
        fan_in, fan_out = shape
        limit = jnp.sqrt(6.0 / (fan_in + fan_out))
        return jax.random.uniform(k, shape, jnp.float32, -limit, limit)

    # Parameters (GCNConv weight [in, out] + bias [out])
    w1 = glorot(k_w1, (INPUT_DIM, HIDDEN_DIM))
    b1 = 0.1 * jax.random.normal(k_b1, (HIDDEN_DIM,), jnp.float32)
    w2 = glorot(k_w2, (HIDDEN_DIM, OUTPUT_DIM))
    b2 = 0.1 * jax.random.normal(k_b2, (OUTPUT_DIM,), jnp.float32)

    def ring_edge_index(n):
        src = jnp.arange(n, dtype=jnp.int32)
        dst = (src + 1) % n
        return jnp.stack(
            [jnp.concatenate([src, dst]), jnp.concatenate([dst, src])], axis=0
        )

    def reference(x, edge_index, n):
        a_hat = build_normalized_adjacency(edge_index, n)
        h = jnp.maximum(a_hat @ (x @ w1) + b1, 0.0)
        return a_hat @ (h @ w2) + b2

    # Test 1: tiny graph (N=8) -> single fused VMEM-resident kernel.
    n1 = 8
    x1 = jax.random.normal(k_x1, (n1, INPUT_DIM), jnp.float32)
    ei1 = ring_edge_index(n1)
    out1 = gcn_forward(x1, ei1, w1, b1, w2, b2)
    jax.block_until_ready(out1)
    ref1 = reference(x1, ei1, n1)
    assert out1.shape == (n1, OUTPUT_DIM)
    assert jnp.allclose(out1, ref1, atol=5e-2, rtol=5e-2), float(
        jnp.max(jnp.abs(out1 - ref1))
    )

    # Test 2: larger graph (N=2000) -> tiled transform + aggregate kernels
    # (N padded to 2048, tm=256, tk=1024, XW VMEM-resident, bf16 operands).
    n2 = 2000
    x2 = jax.random.normal(k_x2, (n2, INPUT_DIM), jnp.float32)
    ei2 = ring_edge_index(n2)
    out2 = gcn_forward(x2, ei2, w1, b1, w2, b2)
    jax.block_until_ready(out2)
    ref2 = reference(x2, ei2, n2)
    assert out2.shape == (n2, OUTPUT_DIM)
    assert jnp.allclose(out2, ref2, atol=5e-2, rtol=5e-2), float(
        jnp.max(jnp.abs(out2 - ref2))
    )

    print("KERNEL_OK")
</pallas_src>

<mosaic_0001>
module attributes {stable_mosaic.version = 11 : i64} {
  func.func @_fused_gcn_kernel(%arg0: memref<8x8xf32, #tpu.memory_space<vmem>>, %arg1: memref<8x128xf32, #tpu.memory_space<vmem>>, %arg2: memref<128x128xf32, #tpu.memory_space<vmem>>, %arg3: memref<1x128xf32, #tpu.memory_space<vmem>>, %arg4: memref<128x128xf32, #tpu.memory_space<vmem>>, %arg5: memref<1x128xf32, #tpu.memory_space<vmem>>, %arg6: memref<8x128xf32, #tpu.memory_space<vmem>>) attributes {dimension_semantics = [], scalar_prefetch = 0 : i64, scratch_operands = 0 : i64, tpu.core_type = #tpu.core_type<tc>} {
    %c0 = arith.constant 0 : index
    %c0_0 = arith.constant 0 : index
    %0 = vector.load %arg0[%c0, %c0_0] : memref<8x8xf32, #tpu.memory_space<vmem>>, vector<8x8xf32>
    %c0_1 = arith.constant 0 : index
    %c0_2 = arith.constant 0 : index
    %1 = vector.load %arg1[%c0_1, %c0_2] : memref<8x128xf32, #tpu.memory_space<vmem>>, vector<8x128xf32>
    %c0_3 = arith.constant 0 : index
    %c0_4 = arith.constant 0 : index
    %2 = vector.load %arg2[%c0_3, %c0_4] : memref<128x128xf32, #tpu.memory_space<vmem>>, vector<128x128xf32>
    %cst = arith.constant dense<0.000000e+00> : vector<8x128xf32>
    %3 = tpu.matmul %1, %2, %cst {dimension_numbers = #tpu.dot_dimension_numbers<[1], [0], [0], [1], [0, 0, 1, 1], [], []>} : vector<8x128xf32>, vector<128x128xf32>, vector<8x128xf32> -> vector<8x128xf32>
    %cst_5 = arith.constant dense<0.000000e+00> : vector<8x128xf32>
    %4 = tpu.matmul %0, %3, %cst_5 {dimension_numbers = #tpu.dot_dimension_numbers<[1], [0], [0], [1], [0, 0, 1, 1], [], []>} : vector<8x8xf32>, vector<8x128xf32>, vector<8x128xf32> -> vector<8x128xf32>
    %c0_6 = arith.constant 0 : index
    %c0_7 = arith.constant 0 : index
    %5 = vector.load %arg3[%c0_6, %c0_7] : memref<1x128xf32, #tpu.memory_space<vmem>>, vector<1x128xf32>
    %6 = vector.broadcast %5 : vector<1x128xf32> to vector<8x128xf32>
    %7 = arith.addf %4, %6 : vector<8x128xf32>
    %cst_8 = arith.constant 0.000000e+00 : f32
    %8 = vector.broadcast %cst_8 : f32 to vector<8x128xf32>
    %9 = arith.maximumf %7, %8 : vector<8x128xf32>
    %c0_9 = arith.constant 0 : index
    %c0_10 = arith.constant 0 : index
    %10 = vector.load %arg4[%c0_9, %c0_10] : memref<128x128xf32, #tpu.memory_space<vmem>>, vector<128x128xf32>
    %cst_11 = arith.constant dense<0.000000e+00> : vector<8x128xf32>
    %11 = tpu.matmul %9, %10, %cst_11 {dimension_numbers = #tpu.dot_dimension_numbers<[1], [0], [0], [1], [0, 0, 1, 1], [], []>} : vector<8x128xf32>, vector<128x128xf32>, vector<8x128xf32> -> vector<8x128xf32>
    %cst_12 = arith.constant dense<0.000000e+00> : vector<8x128xf32>
    %12 = tpu.matmul %0, %11, %cst_12 {dimension_numbers = #tpu.dot_dimension_numbers<[1], [0], [0], [1], [0, 0, 1, 1], [], []>} : vector<8x8xf32>, vector<8x128xf32>, vector<8x128xf32> -> vector<8x128xf32>
    %c0_13 = arith.constant 0 : index
    %c0_14 = arith.constant 0 : index
    %13 = vector.load %arg5[%c0_13, %c0_14] : memref<1x128xf32, #tpu.memory_space<vmem>>, vector<1x128xf32>
    %14 = vector.broadcast %13 : vector<1x128xf32> to vector<8x128xf32>
    %15 = arith.addf %12, %14 : vector<8x128xf32>
    %c0_15 = arith.constant 0 : index
    %c0_16 = arith.constant 0 : index
    %16 = vector.load %arg6[%c0_15, %c0_16] : memref<8x128xf32, #tpu.memory_space<vmem>>, vector<8x128xf32>
    tpu.vector_store %arg6[%c0_15, %c0_16], %15 {strides = array<i32>} : memref<8x128xf32, #tpu.memory_space<vmem>>, vector<8x128xf32>,
    return
  }
}

</mosaic_0001>

<bundles_post_ra>
// kernel: tpu_custom_call.1
= control target key start
LH: loop header
LB: loop body
LE: loop exit
PB: predicated region body
PF: predicated region fallthrough
CT: control target
= control target key end

     0   :  { %11 = vsyncpa [#allocation3], 0  ;;  %s857_s0 = inlined_call_operand.hbm [shape: f32[8,8], index: 0, kind: input, shape index: {}]   ;;  %s858_s1 = inlined_call_operand.hbm [shape: f32[8,128], index: 1, kind: input, shape index: {}]   ;;  %s859_s2 = inlined_call_operand.hbm [shape: f32[128,128], index: 2, kind: input, shape index: {}]   ;;  %s860_s3 = inlined_call_operand.vmem [shape: f32[1,128], index: 3, kind: input, shape index: {}]   ;;  %s861_s4 = inlined_call_operand.hbm [shape: f32[128,128], index: 4, kind: input, shape index: {}]   ;;  %s862_s5 = inlined_call_operand.vmem [shape: f32[1,128], index: 5, kind: input, shape index: {}]   ;;  %s863_s6 = inlined_call_operand.hbm [shape: f32[8,128], index: 6, kind: output, shape index: {}]  }
   0x1   :  { %12 = vsyncpa [#allocation6], 0 }
   0x2   :  { %13 = vsyncpa [#allocation9], 0 }
   0x3   :  { %14 = vsyncpa [#allocation4], 0  ;;  %s724_s21 = smov [#allocation5]   ;;  %s725_s23 = smov [#allocation2]  }
   0x4   :  { %s31_s22 = sshll.u32 %s724_s21, 4  ;;  %s21_s24 = sshll.u32 %s725_s23, 4  ;;  %s32_s22 = int_to_ptr.vmem [resolvable:$true] %s31_s22  ;;  %s22_s24 = int_to_ptr.vmem [resolvable:$true] %s21_s24 }
   0x5   :  { %s606_s27 = scalar_lea.hbm %s858_s1, 128 }
   0x6   :  { %p607_p0 = scmp.ne.s32.totalorder %s858_s1, %s606_s27  ;;  %p610_p1 = scmp.lt.u32.totalorder %s606_s27, %s858_s1 }
   0x8   :  { %p612_p2 = pnand %p610_p1, %p607_p0 }
   0xa   :  { %615 = shalt.err (!%p612_p2)
}
   0xb   :  { %s616_s8 = scalar_lea.vmem %s32_s22, 128  ;;  %p621_p4 = scmp.lt.s32.totalorder %s32_s22, %s32_s22 }
   0xc   :  { %p617_p3 = scmp.ne.s32.totalorder %s32_s22, %s616_s8  ;;  %p622_p5 = scmp.lt.s32.totalorder %s616_s8, %s616_s8 }
   0xe   :  { %p623_p6 = por %p622_p5, %p621_p4 }
  0x10   :  { %p624_p7 = pnand %p623_p6, %p617_p3 }
  0x12   :  { %627 = shalt.err (!%p624_p7)
}
  0x13   :  { %34 = dma.hbm_to_vmem [thread:$0]  %s858_s1, 128, %s32_s22, [#allocation6]  }
  0x14   :  { %s628_s13 = scalar_lea.hbm %s857_s0, 128 }
  0x15   :  { %p629_p8 = scmp.ne.s32.totalorder %s857_s0, %s628_s13  ;;  %p632_p9 = scmp.lt.u32.totalorder %s628_s13, %s857_s0 }
  0x17   :  { %p634_p10 = pnand %p632_p9, %p629_p8 }
  0x19   :  { %637 = shalt.err (!%p634_p10)
}
  0x1a   :  { %s638_s18 = scalar_lea.vmem %s22_s24, 128  ;;  %p643_p12 = scmp.lt.s32.totalorder %s22_s24, %s22_s24 }
  0x1b   :  { %p639_p11 = scmp.ne.s32.totalorder %s22_s24, %s638_s18  ;;  %p644_p13 = scmp.lt.s32.totalorder %s638_s18, %s638_s18 }
  0x1d   :  { %p645_p0 = por %p644_p13, %p643_p12 }
  0x1f   :  { %p646_p1 = pnand %p645_p0, %p639_p11 }
  0x21   :  { %649 = shalt.err (!%p646_p1)
}
  0x22   :  { %24 = dma.hbm_to_vmem [thread:$0]  %s857_s0, 128, %s22_s24, [#allocation3]  }
  0x23   :  { %s726_s20 = smov [#allocation7]   ;;  %s650_s25 = scalar_lea.hbm %s859_s2, 2048 }
  0x24   :  { %s40_s21 = sshll.u32 %s726_s20, 4  ;;  %p651_p2 = scmp.ne.s32.totalorder %s859_s2, %s650_s25  ;;  %s41_s21 = int_to_ptr.vmem [resolvable:$true] %s40_s21 }
  0x25   :  { %p654_p3 = scmp.lt.u32.totalorder %s650_s25, %s859_s2 }
  0x27   :  { %p656_p4 = pnand %p654_p3, %p651_p2 }
  0x29   :  { %659 = shalt.err (!%p656_p4)
}
  0x2a   :  { %s660_s30 = scalar_lea.vmem %s41_s21, 2048  ;;  %p665_p6 = scmp.lt.s32.totalorder %s41_s21, %s41_s21 }
  0x2b   :  { %p661_p5 = scmp.ne.s32.totalorder %s41_s21, %s660_s30  ;;  %p666_p7 = scmp.lt.s32.totalorder %s660_s30, %s660_s30 }
  0x2d   :  { %p667_p8 = por %p666_p7, %p665_p6 }
  0x2f   :  { %p668_p9 = pnand %p667_p8, %p661_p5 }
  0x31   :  { %671 = shalt.err (!%p668_p9)
}
  0x32   :  { %s727_s0 = smov 128   ;;  %s728_s24 = smov 8  }
  0x33   :  { %46 = dma.hbm_to_vmem [thread:$0]  %s859_s2, 2048, %s41_s21, [#allocation6], %s727_s0, %s727_s0, %s728_s24  }
  0x34   :  { %s729_s9 = smov [#allocation8]   ;;  %s672_s13 = scalar_lea.hbm %s861_s4, 2048 }
  0x35   :  { %s54_s10 = sshll.u32 %s729_s9, 4  ;;  %p673_p10 = scmp.ne.s32.totalorder %s861_s4, %s672_s13  ;;  %s55_s10 = int_to_ptr.vmem [resolvable:$true] %s54_s10 }
  0x36   :  { %p676_p11 = scmp.lt.u32.totalorder %s672_s13, %s861_s4 }
  0x38   :  { %p678_p12 = pnand %p676_p11, %p673_p10 }
  0x3a   :  { %681 = shalt.err (!%p678_p12)
}
  0x3b   :  { %s682_s18 = scalar_lea.vmem %s55_s10, 2048  ;;  %p687_p0 = scmp.lt.s32.totalorder %s55_s10, %s55_s10 }
  0x3c   :  { %p683_p13 = scmp.ne.s32.totalorder %s55_s10, %s682_s18  ;;  %p688_p1 = scmp.lt.s32.totalorder %s682_s18, %s682_s18 }
  0x3e   :  { %p689_p2 = por %p688_p1, %p687_p0 }
  0x40   :  { %p690_p3 = pnand %p689_p2, %p683_p13 }
  0x42   :  { %693 = shalt.err (!%p690_p3)
}
  0x43   :  { %60 = dma.hbm_to_vmem [thread:$0]  %s861_s4, 2048, %s55_s10, [#allocation9], %s727_s0, %s727_s0, %s728_s24  }
  0x44   :  { %716 = dma.done.wait [#allocation3], 128  }
  0x45   :  { %717 = vsyncadd [#allocation3], 4294967168 }
  0x46   :  { %718 = dma.done.wait [#allocation6], 2176  }
  0x47   :  { %719 = vsyncadd [#allocation6], 4294965120 }
  0x48   :  { %720 = dma.done.wait [#allocation9], 2048  }
  0x49   :  { %721 = vsyncadd [#allocation9], 4294965248  ;;  %v730_v0 = vmov 0.0|0.0   ;;  %vm731_vm0 = vmmov 0   ;;  %v732_v1 = vmov 0.0   ;;  %v77_v2 = vld [vmem:[#allocation7] sm:$0xff] }
  0x4a   :  { %548 = vmatprep.subr.bf16.mxu0 %v730_v0  ;;  %500 = vmatprep.mubr.msk.f32.mxu0 %vm731_vm0, %v732_v1  ;;  %v78_v3 = vld [vmem:[#allocation7 + $0x8] sm:$0xff]  ;;  %v79_v4 = vld [vmem:[#allocation7 + $0x10] sm:$0xff]  ;;  %v80_v6 = vld [vmem:[#allocation7 + $0x18] sm:$0xff]  ;;  %vm170_vm1 = vcmask 64512   ;;  %s733_s22 = smov [#allocation10]  }
  0x4b   :  { %503 = vmatprep.subr.mxu1 %v732_v1  ;;  %505 = vmatprep.mubr.msk.f32.mxu1 %vm731_vm0, %v732_v1  ;;  %v549_v5 = vpack.c.bf16 %v78_v3, %v77_v2  ;;  %v552_v7 = vpack.c.bf16 %v80_v6, %v79_v4  ;;  %v81_v8 = vld [vmem:[#allocation7 + $0x20] sm:$0xff]  ;;  %v82_v9 = vld [vmem:[#allocation7 + $0x28] sm:$0xff]  ;;  %v83_v11 = vld [vmem:[#allocation7 + $0x30] sm:$0xff]  ;;  %s415_s23 = sshll.u32 %s733_s22, 4  ;;  %s416_s23 = int_to_ptr.vmem [resolvable:$true] %s415_s23 }
  0x4c   :  { %v555_v10 = vpack.c.bf16 %v82_v9, %v81_v8  ;;  %v84_v12 = vld [vmem:[#allocation7 + $0x38] sm:$0xff]  ;;  %v85_v14 = vld [vmem:[#allocation7 + $0x40] sm:$0xff]  ;;  %v86_v15 = vld [vmem:[#allocation7 + $0x48] sm:$0xff]  ;;  %p699_p5 = scmp.lt.s32.totalorder %s416_s23, %s416_s23 }
  0x4d   :  { %550 = vmatpush3.bf16.msra.mxu0 %v549_v5  ;;  %v558_v13 = vpack.c.bf16 %v84_v12, %v83_v11  ;;  %v561_v16 = vpack.c.bf16 %v86_v15, %v85_v14  ;;  %v87_v17 = vld [vmem:[#allocation7 + $0x50] sm:$0xff]  ;;  %v88_v18 = vld [vmem:[#allocation7 + $0x58] sm:$0xff]  ;;  %v89_v20 = vld [vmem:[#allocation7 + $0x60] sm:$0xff] }
  0x4e   :  { %551 = vmatprep.subr.bf16.mxu0 %v730_v0  ;;  %v564_v19 = vpack.c.bf16 %v88_v18, %v87_v17  ;;  %v90_v21 = vld [vmem:[#allocation7 + $0x68] sm:$0xff]  ;;  %v91_v23 = vld [vmem:[#allocation7 + $0x70] sm:$0xff]  ;;  %v92_v24 = vld [vmem:[#allocation7 + $0x78] sm:$0xff] }
  0x4f   :  { %v567_v22 = vpack.c.bf16 %v90_v21, %v89_v20  ;;  %v570_v25 = vpack.c.bf16 %v92_v24, %v91_v23  ;;  %v76_v26 = vld [vmem:[#allocation5] sm:$0xff]  ;;  %v245_v27 = vld [vmem:[#allocation8] sm:$0xff]  ;;  %v246_v28 = vld [vmem:[#allocation8 + $0x8] sm:$0xff] }
  0x50   :  { %v75_v29 = vld [vmem:[#allocation2] sm:$0xff]  ;;  %v573_v30 = vpack.c.bf16 %v246_v28, %v245_v27  ;;  %v248_v33 = vld [vmem:[#allocation8 + $0x18] sm:$0xff]  ;;  %v249_v36 = vld [vmem:[#allocation8 + $0x20] sm:$0xff] }
  0x51   :  { %553 = vmatpush3.bf16.msra.mxu0 %v552_v7  ;;  %v247_v32 = vld [vmem:[#allocation8 + $0x10] sm:$0xff]  ;;  %v250_v37 = vld [vmem:[#allocation8 + $0x28] sm:$0xff]  ;;  %v252_v40 = vld [vmem:[#allocation8 + $0x38] sm:$0xff] }
  0x52   :  { %554 = vmatprep.subr.bf16.mxu0 %v730_v0  ;;  %v576_v35 = vpack.c.bf16 %v248_v33, %v247_v32  ;;  %v579_v38 = vpack.c.bf16 %v250_v37, %v249_v36  ;;  %v251_v39 = vld [vmem:[#allocation8 + $0x30] sm:$0xff]  ;;  %v253_v42 = vld [vmem:[#allocation8 + $0x40] sm:$0xff]  ;;  %v254_v43 = vld [vmem:[#allocation8 + $0x48] sm:$0xff] }
  0x53   :  { %v582_v41 = vpack.c.bf16 %v252_v40, %v251_v39  ;;  %v585_v44 = vpack.c.bf16 %v254_v43, %v253_v42  ;;  %v255_v45 = vld [vmem:[#allocation8 + $0x50] sm:$0xff]  ;;  %v256_v46 = vld [vmem:[#allocation8 + $0x58] sm:$0xff]  ;;  %v257_v48 = vld [vmem:[#allocation8 + $0x60] sm:$0xff] }
  0x54   :  { %v588_v47 = vpack.c.bf16 %v256_v46, %v255_v45  ;;  %v258_v49 = vld [vmem:[#allocation8 + $0x68] sm:$0xff]  ;;  %v259_v51 = vld [vmem:[#allocation8 + $0x70] sm:$0xff]  ;;  %v260_v52 = vld [vmem:[#allocation8 + $0x78] sm:$0xff] }
  0x55   :  { %556 = vmatpush3.bf16.msra.mxu0 %v555_v10  ;;  %v591_v50 = vpack.c.bf16 %v258_v49, %v257_v48  ;;  %v594_v53 = vpack.c.bf16 %v260_v52, %v259_v51  ;;  %v426_v54 = vld [vmem:[%s860_s3] ss:$0 sm:$0xff]  ;;  %s694_s3 = scalar_lea.vmem %s416_s23, 128 }
  0x56   :  { %557 = vmatprep.subr.bf16.mxu0 %v730_v0  ;;  %v428_v61 = vld [vmem:[%s862_s5] ss:$0 sm:$0xff]  ;;  %p695_p4 = scmp.ne.s32.totalorder %s416_s23, %s694_s3  ;;  %p700_p6 = scmp.lt.s32.totalorder %s694_s3, %s694_s3 }
  0x58   :  { %p701_p7 = por %p700_p6, %p699_p5 }
  0x59   :  { %559 = vmatpush3.bf16.msra.mxu0 %v558_v13 }
  0x5a   :  { %560 = vmatprep.subr.bf16.mxu0 %v730_v0  ;;  %p702_p8 = pnand %p701_p7, %p695_p4 }
  0x5d   :  { %562 = vmatpush3.bf16.msra.mxu0 %v561_v16 }
  0x5e   :  { %563 = vmatprep.subr.bf16.mxu0 %v730_v0 }
  0x61   :  { %565 = vmatpush3.bf16.msra.mxu0 %v564_v19 }
  0x62   :  { %566 = vmatprep.subr.bf16.mxu0 %v730_v0 }
  0x65   :  { %568 = vmatpush3.bf16.msra.mxu0 %v567_v22 }
  0x66   :  { %569 = vmatprep.subr.bf16.mxu0 %v730_v0 }
  0x69   :  { %571 = vmatpush3.bf16.msra.mxu0 %v570_v25 }
  0x6a   :  { %543 = vmatprep.subr.mxu0 %v732_v1 }
  0x6c   :  { %501 = vmatmul.mubr.f32.vlgmr.msra.gmra.mrb[0].mxu0 %v76_v26 }
  0x6d   :  { %545 = vmatprep.mubr.msk.f32.mxu0 %vm731_vm0, %v732_v1 }
 0x13f   :  { %v159_v31 = vpop.f32.mrb[0].mxu0 }
 0x140   :  { %v502_v34 = vpop.f32.mrb[1].mxu0  ;;  %504 = vmatpush3.msra.mxu1 %v159_v31 }
 0x141   :  { %506 = vmatmul.mubr.msk.f32.vlgmr.msra.gmra.mrb[0].mxu1 %vm170_vm1, %v75_v29  ;;  %572 = vmatprep.subr.bf16.mxu1 %v730_v0 }
 0x142   :  { %574 = vmatpush3.bf16.msra.mxu1 %v573_v30  ;;  %540 = vmatprep.mubr.msk.f32.mxu1 %vm731_vm0, %v732_v1 }
 0x143   :  { %575 = vmatprep.subr.bf16.mxu1 %v730_v0 }
 0x146   :  { %577 = vmatpush3.bf16.msra.mxu1 %v576_v35 }
 0x147   :  { %578 = vmatprep.subr.bf16.mxu1 %v730_v0 }
 0x14a   :  { %580 = vmatpush3.bf16.msra.mxu1 %v579_v38 }
 0x14b   :  { %581 = vmatprep.subr.bf16.mxu1 %v730_v0 }
 0x14e   :  { %583 = vmatpush3.bf16.msra.mxu1 %v582_v41 }
 0x14f   :  { %584 = vmatprep.subr.bf16.mxu1 %v730_v0 }
 0x152   :  { %586 = vmatpush3.bf16.msra.mxu1 %v585_v44 }
 0x153   :  { %587 = vmatprep.subr.bf16.mxu1 %v730_v0 }
 0x156   :  { %589 = vmatpush3.bf16.msra.mxu1 %v588_v47 }
 0x157   :  { %590 = vmatprep.subr.bf16.mxu1 %v730_v0 }
 0x15a   :  { %592 = vmatpush3.bf16.msra.mxu1 %v591_v50 }
 0x15b   :  { %593 = vmatprep.subr.bf16.mxu1 %v730_v0 }
 0x15e   :  { %595 = vmatpush3.bf16.msra.mxu1 %v594_v53 }
 0x214   :  { %v240_v55 = vpop.f32.mrb[0].mxu1 }
 0x215   :  { %v241_v56 = vadd.f32 %v426_v54, %v240_v55  ;;  %v507_v57 = vpop.f32.mrb[1].mxu1 }
 0x217   :  { %v244_v58 = vmax.f32 %v241_v56, 0.0 }
 0x219   :  { %541 = vmatmul.mubr.f32.vlgmr.msra.gmra.mrb[2].mxu1 %v244_v58 }
 0x2ec   :  { %v327_v59 = vpop.f32.mrb[2].mxu1 }
 0x2ed   :  { %v542_v60 = vpop.f32.mrb[3].mxu1  ;;  %544 = vmatpush3.msra.mxu0 %v327_v59 }
 0x2ee   :  { %546 = vmatmul.mubr.msk.f32.vlgmr.msra.gmra.mrb[2].mxu0 %vm170_vm1, %v75_v29 }
 0x3c1   :  { %v404_v62 = vpop.f32.mrb[2].mxu0 }
 0x3c2   :  { %v405_v63 = vadd.f32 %v428_v61, %v404_v62  ;;  %v547_v0 = vpop.f32.mrb[3].mxu0 }
 0x3c4   :  { %408 = vst [vmem:[#allocation10] sm:$0xff] %v405_v63 }
 0x3c5   :  { %705 = shalt.err (!%p702_p8)
}
 0x3c6   :  { %s706_s27 = scalar_lea.hbm %s863_s6, 128 }
 0x3c7   :  { %p707_p9 = scmp.ne.s32.totalorder %s863_s6, %s706_s27  ;;  %p710_p10 = scmp.lt.u32.totalorder %s706_s27, %s863_s6 }
 0x3c9   :  { %p712_p11 = pnand %p710_p10, %p707_p9 }
 0x3cb   :  { %715 = shalt.err (!%p712_p11)
}
 0x3cc   :  { %418 = dma.vmem_to_hbm [thread:$0]  %s416_s23, 128, %s863_s6, [#allocation4]  }
 0x3cd   :  { %722 = dma.done.wait [#allocation4], 128  }
 0x3ce   :  { %723 = vsyncadd [#allocation4], 4294967168 }
 0x3cf   :  { %422 = vsyncpa [#allocation3], 1 }
 0x3d0   :  { %423 = vsyncpa [#allocation6], 1 }
 0x3d1   :  { %424 = vsyncpa [#allocation9], 1 }
 0x3d2   :  { %425 = vsyncpa [#allocation4], 1 }

</bundles_post_ra>
